<compile_context>
chip_gen: v5e
topology: v5e:2x2
jax: 0.10.0
libtpu: 0.0.40
codegen_flags: <defaults>
</compile_context>

<pallas_src>
import math

import jax
import jax.numpy as jnp
from jax.experimental import pallas as pl
from jax.experimental.pallas import tpu as pltpu


def _round_up(x: int, m: int) -> int:
    return ((x + m - 1) // m) * m


def _round_down(x: int, m: int) -> int:
    return (x // m) * m


def _make_encoder_kernel(n_hidden: int, n_heads: int, precision):
    """refs = (x, w_0, b_0, ..., w_{k-1}, b_{k-1}, out_0[, out_1])."""

    def kernel(*refs):
        x_ref = refs[0]
        p_refs = refs[1:1 + 2 * (n_hidden + n_heads)]
        out_refs = refs[1 + 2 * (n_hidden + n_heads):]

        h = x_ref[...]
        # Hidden stack: Linear + ReLU.  MXU matmul with f32 accumulation; the
        # operand cast happens here (per tile) so the wrapper never copies x.
        # Bias add + ReLU stay in f32 on the VPU (v5e has no bf16 VPU).
        for li in range(n_hidden):
            w = p_refs[2 * li][...]
            b = p_refs[2 * li + 1][...]
            h = jnp.dot(h.astype(w.dtype), w,
                        preferred_element_type=jnp.float32,
                        precision=precision)
            h = jnp.maximum(h + b.astype(jnp.float32), 0.0)
        # Head(s): plain Linear (fc, or fc_mu / fc_var when variational).
        for hi in range(n_heads):
            w = p_refs[2 * (n_hidden + hi)][...]
            b = p_refs[2 * (n_hidden + hi) + 1][...]
            y = jnp.dot(h.astype(w.dtype), w,
                        preferred_element_type=jnp.float32,
                        precision=precision)
            out_refs[hi][...] = (y + b.astype(jnp.float32)).astype(
                out_refs[hi].dtype)

    return kernel


def encoder_forward(x, hidden_params, head_params, *, tile_b=None,
                    compute_dtype=jnp.bfloat16, out_dtype=None,
                    precision=None, vmem_budget_bytes=48 * 1024 * 1024):
    """Fused MLP encoder forward.

    hidden_params: list of (w, b) for the Linear+ReLU stack, w: (in, out), b: (1, out)
    head_params:   list of (w, b) heads; 1 head (fc) or 2 (fc_mu, fc_var).
    Returns a single array for one head, or a tuple (mu, logvar) for two.

    Defaults: bf16 MXU operands with f32 accumulation.  For bit fidelity pass
    compute_dtype=jnp.float32 (optionally precision=jax.lax.Precision.HIGHEST).
    """
    B, F = x.shape
    out_dtype = x.dtype if out_dtype is None else jnp.dtype(out_dtype)
    compute_dtype = jnp.dtype(compute_dtype)
    n_hidden, n_heads = len(hidden_params), len(head_params)

    # Cast weights once in the wrapper (resident blocks are DMA'd once; the
    # bf16 cast halves their DMA bytes + VMEM).  Biases stay in f32.
    params, widths = [], []
    for (w, b) in list(hidden_params) + list(head_params):
        params.append(jnp.asarray(w).astype(compute_dtype))
        params.append(jnp.asarray(b))
        widths.append(w.shape[1])
    head_widths = widths[n_hidden:]
    out_total = sum(head_widths)

    # ---- VMEM-aware batch tile (v7x has only 64 MiB physical VMEM) ----------
    x_item = jnp.dtype(x.dtype).itemsize
    o_item = out_dtype.itemsize
    resident = 2 * sum(int(p.size) * p.dtype.itemsize for p in params)
    per_row = (2 * F * x_item                 # double-buffered x tile
               + 2 * out_total * o_item       # double-buffered out tile(s)
               + 4 * (F + sum(widths)))       # f32 temporaries (cast / act)
    cap = (int(vmem_budget_bytes * 0.6) - resident) // max(per_row, 1)
    cap = max(16, _round_down(int(cap), 16))
    if tile_b is None:
        # Whole batch in one grid step whenever it fits: at the module's
        # default shapes the problem is a single MXU pass, so never pay the
        # per-grid-step pipeline overhead more than once.
        tile_b = B if B <= cap else cap
    elif tile_b >= B:
        tile_b = B
    else:
        tile_b = max(16, _round_up(min(tile_b, cap), 16))
    grid = (pl.cdiv(B, tile_b),)

    kernel = _make_encoder_kernel(n_hidden, n_heads, precision)

    x_spec = pl.BlockSpec((tile_b, F), lambda i: (i, 0))
    out_shape = tuple(jax.ShapeDtypeStruct((B, L), out_dtype)
                      for L in head_widths)
    out_specs = tuple(pl.BlockSpec((tile_b, L), lambda i: (i, 0))
                      for L in head_widths)

    # Advisory cost estimate for the XLA scheduler.
    in_dim, flops = F, 0
    for li in range(n_hidden):
        flops += 2 * B * in_dim * widths[li]
        in_dim = widths[li]
    for hw in head_widths:
        flops += 2 * B * in_dim * hw
    cost = pl.CostEstimate(
        flops=flops, transcendentals=0,
        bytes_accessed=(B * F * x_item
                        + sum(int(p.size) * p.dtype.itemsize for p in params)
                        + B * out_total * o_item))

    vmem_limit = int(min(vmem_budget_bytes,
                         max(32 * 1024 * 1024,
                             resident + per_row * tile_b + (4 << 20))))

    def _build(single_buffer_weights: bool):
        # Resident operands (constant index_map) are never re-DMA'd, so a
        # second pipeline buffer is wasted VMEM: request single buffering.
        kw = dict(pipeline_mode=pl.Buffered(1)) if single_buffer_weights else {}
        param_specs = [pl.BlockSpec(p.shape, lambda i: (0, 0), **kw)
                       for p in params]
        return pl.pallas_call(
            kernel,
            out_shape=out_shape,
            grid=grid,
            in_specs=[x_spec] + param_specs,
            out_specs=out_specs,
            compiler_params=pltpu.CompilerParams(
                # "parallel": batch grid steps are independent; grid == (1,)
                # at the default tiny config.
                # TODO(synk): for very large B on v7x, evaluate CORE_PARALLEL /
                # an explicit core_map so both TensorCores are used.
                dimension_semantics=("parallel",),
                vmem_limit_bytes=vmem_limit),
            cost_estimate=cost,
        )

    args = (x, *params)
    try:
        outs = _build(True)(*args)
    except Exception:
        # Fallback for JAX builds without BlockSpec(pipeline_mode=...).
        outs = _build(False)(*args)

    return outs[0] if n_heads == 1 else tuple(outs)


def init_linear(key, in_features, out_features, dtype=jnp.float32):
    """Deterministic init mimicking torch.nn.Linear default (uniform +/- 1/sqrt(fan_in)).
    Weight returned pre-transposed as (in_features, out_features)."""
    kw, kb = jax.random.split(key)
    bound = 1.0 / math.sqrt(in_features)
    w = jax.random.uniform(kw, (in_features, out_features), dtype,
                           minval=-bound, maxval=bound)
    b = jax.random.uniform(kb, (1, out_features), dtype,
                           minval=-bound, maxval=bound)
    return w, b


if __name__ == "__main__":
    # Module configuration: Encoder(latent_dims=16, feature_size=64,
    # layer_sizes=[128]); small shapes consistent with the module.
    batch = 32
    feature_size = 64
    hidden = 128
    latent_dims = 16

    key = jax.random.PRNGKey(0)
    kx, k1, k2, k3 = jax.random.split(key, 4)

    x = jax.random.normal(kx, (batch, feature_size), jnp.float32)
    w1, b1 = init_linear(k1, feature_size, hidden)
    w2, b2 = init_linear(k2, hidden, latent_dims)

    # Pure-JAX reference (matches the PyTorch forward).
    h_ref = jnp.maximum(x @ w1 + b1, 0.0)
    y_ref = h_ref @ w2 + b2

    # Default path: bf16 MXU operands, f32 accumulation, single grid step.
    y = encoder_forward(x, [(w1, b1)], [(w2, b2)])
    y = jax.block_until_ready(y)
    assert y.shape == (batch, latent_dims)
    assert jnp.allclose(y, y_ref, atol=1e-1, rtol=1e-1)

    # Bit-fidelity opt-in: f32 operands (documented f32 tolerance).
    y32 = encoder_forward(x, [(w1, b1)], [(w2, b2)],
                          compute_dtype=jnp.float32)
    y32 = jax.block_until_ready(y32)
    assert y32.shape == (batch, latent_dims)
    assert jnp.allclose(y32, y_ref, atol=1e-5, rtol=1e-5)

    # variational=True: fc_mu / fc_var twin heads sharing the hidden stack.
    wv, bv = init_linear(k3, hidden, latent_dims)
    mu, logvar = encoder_forward(x, [(w1, b1)], [(w2, b2), (wv, bv)],
                                 compute_dtype=jnp.float32)
    jax.block_until_ready((mu, logvar))
    logvar_ref = h_ref @ wv + bv
    assert mu.shape == (batch, latent_dims)
    assert logvar.shape == (batch, latent_dims)
    assert jnp.allclose(mu, y_ref, atol=1e-5, rtol=1e-5)
    assert jnp.allclose(logvar, logvar_ref, atol=1e-5, rtol=1e-5)

    print("KERNEL_OK")
</pallas_src>

<mosaic_0001>
module attributes {stable_mosaic.version = 11 : i64} {
  func.func @kernel(%arg0: i32, %arg1: memref<32x64xf32, #tpu.memory_space<vmem>>, %arg2: memref<64x128xbf16, #tpu.memory_space<vmem>>, %arg3: memref<1x128xf32, #tpu.memory_space<vmem>>, %arg4: memref<128x16xbf16, #tpu.memory_space<vmem>>, %arg5: memref<1x16xf32, #tpu.memory_space<vmem>>, %arg6: memref<32x16xf32, #tpu.memory_space<vmem>>) attributes {dimension_semantics = [#tpu.dimension_semantics<parallel>], iteration_bounds = array<i64: 1>, scalar_prefetch = 0 : i64, scratch_operands = 0 : i64, tpu.core_type = #tpu.core_type<tc>, window_params = [{transform_indices = @transform_0, window_bounds = array<i64: 32, 64>}, {pipeline_mode = #tpu.pipeline_mode<synchronous>, transform_indices = @transform_1, window_bounds = array<i64: 64, 128>}, {pipeline_mode = #tpu.pipeline_mode<synchronous>, transform_indices = @transform_2, window_bounds = array<i64: 1, 128>}, {pipeline_mode = #tpu.pipeline_mode<synchronous>, transform_indices = @transform_3, window_bounds = array<i64: 128, 16>}, {pipeline_mode = #tpu.pipeline_mode<synchronous>, transform_indices = @transform_4, window_bounds = array<i64: 1, 16>}, {transform_indices = @transform_5, window_bounds = array<i64: 32, 16>}]} {
    %c0 = arith.constant 0 : index
    %c0_0 = arith.constant 0 : index
    %0 = vector.load %arg1[%c0, %c0_0] : memref<32x64xf32, #tpu.memory_space<vmem>>, vector<32x64xf32>
    %c0_1 = arith.constant 0 : index
    %c0_2 = arith.constant 0 : index
    %1 = vector.load %arg2[%c0_1, %c0_2] : memref<64x128xbf16, #tpu.memory_space<vmem>>, vector<64x128xbf16>
    %c0_3 = arith.constant 0 : index
    %c0_4 = arith.constant 0 : index
    %2 = vector.load %arg3[%c0_3, %c0_4] : memref<1x128xf32, #tpu.memory_space<vmem>>, vector<1x128xf32>
    %3 = arith.truncf %0 : vector<32x64xf32> to vector<32x64xbf16>
    %cst = arith.constant dense<0.000000e+00> : vector<32x128xf32>
    %4 = tpu.matmul %3, %1, %cst {dimension_numbers = #tpu.dot_dimension_numbers<[1], [0], [0], [1], [0, 0, 1, 1], [], []>} : vector<32x64xbf16>, vector<64x128xbf16>, vector<32x128xf32> -> vector<32x128xf32>
    %5 = vector.broadcast %2 : vector<1x128xf32> to vector<32x128xf32>
    %6 = arith.addf %4, %5 : vector<32x128xf32>
    %cst_5 = arith.constant 0.000000e+00 : f32
    %7 = vector.broadcast %cst_5 : f32 to vector<32x128xf32>
    %8 = arith.maximumf %6, %7 : vector<32x128xf32>
    %c0_6 = arith.constant 0 : index
    %c0_7 = arith.constant 0 : index
    %9 = vector.load %arg4[%c0_6, %c0_7] : memref<128x16xbf16, #tpu.memory_space<vmem>>, vector<128x16xbf16>
    %c0_8 = arith.constant 0 : index
    %c0_9 = arith.constant 0 : index
    %10 = vector.load %arg5[%c0_8, %c0_9] : memref<1x16xf32, #tpu.memory_space<vmem>>, vector<1x16xf32>
    %11 = arith.truncf %8 : vector<32x128xf32> to vector<32x128xbf16>
    %cst_10 = arith.constant dense<0.000000e+00> : vector<32x16xf32>
    %12 = tpu.matmul %11, %9, %cst_10 {dimension_numbers = #tpu.dot_dimension_numbers<[1], [0], [0], [1], [0, 0, 1, 1], [], []>} : vector<32x128xbf16>, vector<128x16xbf16>, vector<32x16xf32> -> vector<32x16xf32>
    %13 = vector.broadcast %10 : vector<1x16xf32> to vector<32x16xf32>
    %14 = arith.addf %12, %13 : vector<32x16xf32>
    %c0_11 = arith.constant 0 : index
    %c0_12 = arith.constant 0 : index
    %15 = vector.load %arg6[%c0_11, %c0_12] : memref<32x16xf32, #tpu.memory_space<vmem>>, vector<32x16xf32>
    tpu.vector_store %arg6[%c0_11, %c0_12], %14 {strides = array<i32>} : memref<32x16xf32, #tpu.memory_space<vmem>>, vector<32x16xf32>,
    return
  }
  func.func @transform_0(%arg0: i32) -> (i32, i32) {
    %c0_i32 = arith.constant 0 : i32
    %c0_i32_0 = arith.constant 0 : i32
    return %arg0, %c0_i32 : i32, i32
  }
  func.func @transform_1(%arg0: i32) -> (i32, i32) {
    %c0_i32 = arith.constant 0 : i32
    %c0_i32_0 = arith.constant 0 : i32
    %c0_i32_1 = arith.constant 0 : i32
    return %c0_i32, %c0_i32_0 : i32, i32
  }
  func.func @transform_2(%arg0: i32) -> (i32, i32) {
    %c0_i32 = arith.constant 0 : i32
    %c0_i32_0 = arith.constant 0 : i32
    %c0_i32_1 = arith.constant 0 : i32
    return %c0_i32, %c0_i32_0 : i32, i32
  }
  func.func @transform_3(%arg0: i32) -> (i32, i32) {
    %c0_i32 = arith.constant 0 : i32
    %c0_i32_0 = arith.constant 0 : i32
    %c0_i32_1 = arith.constant 0 : i32
    return %c0_i32, %c0_i32_0 : i32, i32
  }
  func.func @transform_4(%arg0: i32) -> (i32, i32) {
    %c0_i32 = arith.constant 0 : i32
    %c0_i32_0 = arith.constant 0 : i32
    %c0_i32_1 = arith.constant 0 : i32
    return %c0_i32, %c0_i32_0 : i32, i32
  }
  func.func @transform_5(%arg0: i32) -> (i32, i32) {
    %c0_i32 = arith.constant 0 : i32
    %c0_i32_0 = arith.constant 0 : i32
    return %arg0, %c0_i32 : i32, i32
  }
}

module attributes {stable_mosaic.version = 11 : i64} {
  func.func @kernel(%arg0: i32, %arg1: memref<32x64xf32, #tpu.memory_space<vmem>>, %arg2: memref<64x128xbf16, #tpu.memory_space<vmem>>, %arg3: memref<1x128xf32, #tpu.memory_space<vmem>>, %arg4: memref<128x16xbf16, #tpu.memory_space<vmem>>, %arg5: memref<1x16xf32, #tpu.memory_space<vmem>>, %arg6: memref<32x16xf32, #tpu.memory_space<vmem>>) attributes {dimension_semantics = [#tpu.dimension_semantics<parallel>], iteration_bounds = array<i64: 1>, scalar_prefetch = 0 : i64, scratch_operands = 0 : i64, tpu.core_type = #tpu.core_type<tc>, window_params = [{transform_indices = @transform_0, window_bounds = array<i64: 32, 64>}, {pipeline_mode = #tpu.pipeline_mode<synchronous>, transform_indices = @transform_1, window_bounds = array<i64: 64, 128>}, {pipeline_mode = #tpu.pipeline_mode<synchronous>, transform_indices = @transform_2, window_bounds = array<i64: 1, 128>}, {pipeline_mode = #tpu.pipeline_mode<synchronous>, transform_indices = @transform_3, window_bounds = array<i64: 128, 16>}, {pipeline_mode = #tpu.pipeline_mode<synchronous>, transform_indices = @transform_4, window_bounds = array<i64: 1, 16>}, {transform_indices = @transform_5, window_bounds = array<i64: 32, 16>}]} {
    %c0 = arith.constant 0 : index
    %c0_0 = arith.constant 0 : index
    %0 = vector.load %arg1[%c0, %c0_0] : memref<32x64xf32, #tpu.memory_space<vmem>>, vector<32x64xf32>
    %c0_1 = arith.constant 0 : index
    %c0_2 = arith.constant 0 : index
    %1 = vector.load %arg2[%c0_1, %c0_2] : memref<64x128xbf16, #tpu.memory_space<vmem>>, vector<64x128xbf16>
    %c0_3 = arith.constant 0 : index
    %c0_4 = arith.constant 0 : index
    %2 = vector.load %arg3[%c0_3, %c0_4] : memref<1x128xf32, #tpu.memory_space<vmem>>, vector<1x128xf32>
    %3 = arith.truncf %0 : vector<32x64xf32> to vector<32x64xbf16>
    %cst = arith.constant dense<0.000000e+00> : vector<32x128xf32>
    %4 = tpu.matmul %3, %1, %cst {dimension_numbers = #tpu.dot_dimension_numbers<[1], [0], [0], [1], [0, 0, 1, 1], [], []>} : vector<32x64xbf16>, vector<64x128xbf16>, vector<32x128xf32> -> vector<32x128xf32>
    %5 = vector.broadcast %2 : vector<1x128xf32> to vector<32x128xf32>
    %6 = arith.addf %4, %5 : vector<32x128xf32>
    %cst_5 = arith.constant 0.000000e+00 : f32
    %7 = vector.broadcast %cst_5 : f32 to vector<32x128xf32>
    %8 = arith.maximumf %6, %7 : vector<32x128xf32>
    %c0_6 = arith.constant 0 : index
    %c0_7 = arith.constant 0 : index
    %9 = vector.load %arg4[%c0_6, %c0_7] : memref<128x16xbf16, #tpu.memory_space<vmem>>, vector<128x16xbf16>
    %c0_8 = arith.constant 0 : index
    %c0_9 = arith.constant 0 : index
    %10 = vector.load %arg5[%c0_8, %c0_9] : memref<1x16xf32, #tpu.memory_space<vmem>>, vector<1x16xf32>
    %11 = arith.truncf %8 : vector<32x128xf32> to vector<32x128xbf16>
    %cst_10 = arith.constant dense<0.000000e+00> : vector<32x16xf32>
    %12 = tpu.matmul %11, %9, %cst_10 {dimension_numbers = #tpu.dot_dimension_numbers<[1], [0], [0], [1], [0, 0, 1, 1], [], []>} : vector<32x128xbf16>, vector<128x16xbf16>, vector<32x16xf32> -> vector<32x16xf32>
    %13 = vector.broadcast %10 : vector<1x16xf32> to vector<32x16xf32>
    %14 = arith.addf %12, %13 : vector<32x16xf32>
    %c0_11 = arith.constant 0 : index
    %c0_12 = arith.constant 0 : index
    %15 = vector.load %arg6[%c0_11, %c0_12] : memref<32x16xf32, #tpu.memory_space<vmem>>, vector<32x16xf32>
    tpu.vector_store %arg6[%c0_11, %c0_12], %14 {strides = array<i32>} : memref<32x16xf32, #tpu.memory_space<vmem>>, vector<32x16xf32>,
    return
  }
  func.func @transform_0(%arg0: i32) -> (i32, i32) {
    %c0_i32 = arith.constant 0 : i32
    %c0_i32_0 = arith.constant 0 : i32
    return %arg0, %c0_i32 : i32, i32
  }
  func.func @transform_1(%arg0: i32) -> (i32, i32) {
    %c0_i32 = arith.constant 0 : i32
    %c0_i32_0 = arith.constant 0 : i32
    %c0_i32_1 = arith.constant 0 : i32
    return %c0_i32, %c0_i32_0 : i32, i32
  }
  func.func @transform_2(%arg0: i32) -> (i32, i32) {
    %c0_i32 = arith.constant 0 : i32
    %c0_i32_0 = arith.constant 0 : i32
    %c0_i32_1 = arith.constant 0 : i32
    return %c0_i32, %c0_i32_0 : i32, i32
  }
  func.func @transform_3(%arg0: i32) -> (i32, i32) {
    %c0_i32 = arith.constant 0 : i32
    %c0_i32_0 = arith.constant 0 : i32
    %c0_i32_1 = arith.constant 0 : i32
    return %c0_i32, %c0_i32_0 : i32, i32
  }
  func.func @transform_4(%arg0: i32) -> (i32, i32) {
    %c0_i32 = arith.constant 0 : i32
    %c0_i32_0 = arith.constant 0 : i32
    %c0_i32_1 = arith.constant 0 : i32
    return %c0_i32, %c0_i32_0 : i32, i32
  }
  func.func @transform_5(%arg0: i32) -> (i32, i32) {
    %c0_i32 = arith.constant 0 : i32
    %c0_i32_0 = arith.constant 0 : i32
    return %arg0, %c0_i32 : i32, i32
  }
}

</mosaic_0001>

<bundles_post_ra>
// kernel: tpu_custom_call.1
= control target key start
LH: loop header
LB: loop body
LE: loop exit
PB: predicated region body
PF: predicated region fallthrough
CT: control target
= control target key end

     0   :  { %vm63_vm0 = vcmask 523264   ;;  %vm182_vm1 = vcmask 130048   ;;  %s363_s1 = inlined_call_operand.vmem [shape: bf16[64,128], index: 1, kind: input, shape index: {}]   ;;  %s364_s3 = inlined_call_operand.vmem [shape: bf16[128,16], index: 3, kind: input, shape index: {}]   ;;  %s365_s2 = inlined_call_operand.vmem [shape: f32[1,128], index: 2, kind: input, shape index: {}]   ;;  %s366_s0 = inlined_call_operand.vmem [shape: f32[32,64], index: 0, kind: input, shape index: {}]   ;;  %s367_s4 = inlined_call_operand.vmem [shape: f32[1,16], index: 4, kind: input, shape index: {}]   ;;  %s368_s5 = inlined_call_operand.vmem [shape: f32[32,16], index: 5, kind: output, shape index: {}]  }
   0x1   :  { %v244_v0 = vld [vmem:[%s363_s1 + $0x18] sm:$0xff]  ;;  %v243_v1 = vld [vmem:[%s363_s1 + $0x10] sm:$0xff]  ;;  %v242_v4 = vld [vmem:[%s363_s1 + $0x8] sm:$0xff] }
   0x2   :  { %74 = vmatpush.bf16.msra.mxu0 %v244_v0  ;;  %253 = vmatpush.bf16.msra.mxu3 %v244_v0  ;;  %v252_v2 = vld [vmem:[%s364_s3 + $0x38] sm:$0xff]  ;;  %v251_v3 = vld [vmem:[%s364_s3 + $0x30] sm:$0xff]  ;;  %v250_v5 = vld [vmem:[%s364_s3 + $0x28] sm:$0xff] }
   0x3   :  { %163 = vmatpush.bf16.msra.mxu1 %v252_v2  ;;  %257 = vmatpush.bf16.msra.mxu2 %v252_v2  ;;  %v241_v6 = vld [vmem:[%s363_s1] sm:$0xff]  ;;  %v22_v8 = vld [vmem:[%s366_s0 + $0x8] sm:$0xff]  ;;  %v23_v9 = vld [vmem:[%s366_s0 + $0x10] sm:$0xff] }
   0x4   :  { %v21_v7 = vld [vmem:[%s366_s0] sm:$0xff]  ;;  %v24_v10 = vld [vmem:[%s366_s0 + $0x18] sm:$0xff]  ;;  %v247_v15 = vld [vmem:[%s364_s3 + $0x10] sm:$0xff] }
   0x5   :  { %v249_v11 = vld [vmem:[%s364_s3 + $0x20] sm:$0xff]  ;;  %v34_v12 = vpack.c.bf16 %v22_v8, %v21_v7  ;;  %v35_v13 = vpack.c.bf16 %v24_v10, %v23_v9  ;;  %v248_v14 = vld [vmem:[%s364_s3 + $0x18] sm:$0xff]  ;;  %v246_v16 = vld [vmem:[%s364_s3 + $0x8] sm:$0xff] }
   0x6   :  { %75 = vmatpush.bf16.msra.mxu0 %v243_v1  ;;  %254 = vmatpush.bf16.msra.mxu3 %v243_v1  ;;  %v245_v17 = vld [vmem:[%s364_s3] sm:$0xff] }
   0x7   :  { %164 = vmatpush.bf16.msra.mxu1 %v251_v3  ;;  %258 = vmatpush.bf16.msra.mxu2 %v251_v3  ;;  %v265_v19 = vld [vmem:[%s365_s2] ss:$0 sm:$0xff] }
   0x8   :  { %v266_v33 = vld [vmem:[%s367_s4] ss:$0 sm:$0xff] }
   0xa   :  { %76 = vmatpush.bf16.msra.mxu0 %v242_v4  ;;  %255 = vmatpush.bf16.msra.mxu3 %v242_v4 }
   0xb   :  { %165 = vmatpush.bf16.msra.mxu1 %v250_v5  ;;  %259 = vmatpush.bf16.msra.mxu2 %v250_v5 }
   0xe   :  { %77 = vmatpush.bf16.msra.mxu0 %v241_v6  ;;  %256 = vmatpush.bf16.msra.mxu3 %v241_v6 }
   0xf   :  { %166 = vmatpush.bf16.msra.mxu1 %v249_v11  ;;  %260 = vmatpush.bf16.msra.mxu2 %v249_v11 }
  0x11   :  { %207 = vmatmul.msk.bf16.vlgmr.msra.gmra.mxu0 %vm63_vm0, %v34_v12  ;;  %208 = vmatmul.msk.bf16.vlgmr.msra.gmra.mxu3 %vm63_vm0, %v35_v13 }
  0x13   :  { %167 = vmatpush.bf16.msra.mxu1 %v248_v14  ;;  %261 = vmatpush.bf16.msra.mxu2 %v248_v14 }
  0x17   :  { %168 = vmatpush.bf16.msra.mxu1 %v247_v15  ;;  %262 = vmatpush.bf16.msra.mxu2 %v247_v15 }
  0x1b   :  { %169 = vmatpush.bf16.msra.mxu1 %v246_v16  ;;  %263 = vmatpush.bf16.msra.mxu2 %v246_v16 }
  0x1f   :  { %170 = vmatpush.bf16.msra.mxu1 %v245_v17  ;;  %264 = vmatpush.bf16.msra.mxu2 %v245_v17 }
  0x8e   :  { %v79_v18 = vpop.f32.mrf.mxu0 }
  0x8f   :  { %v80_v20 = vadd.f32 %v265_v19, %v79_v18 }
  0x91   :  { %v89_v23 = vmax.f32 %v80_v20, 0.0 }
  0x94   :  { %v84_v21 = vpop.f32.mrf.mxu3 }
  0x95   :  { %v85_v26 = vadd.f32 %v265_v19, %v84_v21 }
  0x96   :  { %v81_v22 = vpop.f32.mrf.mxu0 }
  0x97   :  { %v82_v24 = vadd.f32 %v265_v19, %v81_v22  ;;  %v91_v30 = vmax.f32 %v85_v26, 0.0 }
  0x99   :  { %v90_v25 = vmax.f32 %v82_v24, 0.0 }
  0x9b   :  { %v110_v27 = vpack.c.bf16 %v90_v25, %v89_v23 }
  0x9c   :  { %v86_v28 = vpop.f32.mrf.mxu3 }
  0x9d   :  { %v87_v29 = vadd.f32 %v265_v19, %v86_v28  ;;  %171 = vmatmul.bf16.vlgmr.msra.gmra.mxu1 %v110_v27 }
  0x9f   :  { %v92_v31 = vmax.f32 %v87_v29, 0.0 }
  0xa1   :  { %v111_v32 = vpack.c.bf16 %v92_v31, %v91_v30 }
  0xa3   :  { %176 = vmatmul.bf16.vlgmr.msra.gmra.mxu2 %v111_v32 }
 0x11a   :  { %v172_v34 = vpop.f32.mrf.mxu1 }
 0x11b   :  { %v173_v35 = vadd.f32 %v266_v33, %v172_v34 }
 0x11d   :  { %183 = vst.msk [vmem:[%s368_s5] sm:$0xff] %vm182_vm1, %v173_v35 }
 0x122   :  { %v174_v36 = vpop.f32.mrf.mxu1 }
 0x123   :  { %v175_v37 = vadd.f32 %v266_v33, %v174_v36 }
 0x125   :  { %184 = vst.msk [vmem:[%s368_s5 + $0x8] sm:$0xff] %vm182_vm1, %v175_v37 }
 0x126   :  { %v177_v38 = vpop.f32.mrf.mxu2 }
 0x127   :  { %v178_v39 = vadd.f32 %v266_v33, %v177_v38 }
 0x129   :  { %185 = vst.msk [vmem:[%s368_s5 + $0x10] sm:$0xff] %vm182_vm1, %v178_v39 }
 0x12e   :  { %v179_v40 = vpop.f32.mrf.mxu2 }
 0x12f   :  { %v180_v41 = vadd.f32 %v266_v33, %v179_v40 }
 0x131   :  { %186 = vst.msk [vmem:[%s368_s5 + $0x18] sm:$0xff] %vm182_vm1, %v180_v41 }

// kernel: tpu_custom_call.1
= control target key start
LH: loop header
LB: loop body
LE: loop exit
PB: predicated region body
PF: predicated region fallthrough
CT: control target
= control target key end

     0   :  { %vm63_vm0 = vcmask 523264   ;;  %vm182_vm1 = vcmask 130048   ;;  %s363_s1 = inlined_call_operand.vmem [shape: bf16[64,128], index: 1, kind: input, shape index: {}]   ;;  %s364_s3 = inlined_call_operand.vmem [shape: bf16[128,16], index: 3, kind: input, shape index: {}]   ;;  %s365_s2 = inlined_call_operand.vmem [shape: f32[1,128], index: 2, kind: input, shape index: {}]   ;;  %s366_s0 = inlined_call_operand.vmem [shape: f32[32,64], index: 0, kind: input, shape index: {}]   ;;  %s367_s4 = inlined_call_operand.vmem [shape: f32[1,16], index: 4, kind: input, shape index: {}]   ;;  %s368_s5 = inlined_call_operand.vmem [shape: f32[32,16], index: 5, kind: output, shape index: {}]  }
   0x1   :  { %v244_v0 = vld [vmem:[%s363_s1 + $0x18] sm:$0xff]  ;;  %v243_v1 = vld [vmem:[%s363_s1 + $0x10] sm:$0xff]  ;;  %v242_v4 = vld [vmem:[%s363_s1 + $0x8] sm:$0xff] }
   0x2   :  { %74 = vmatpush.bf16.msra.mxu0 %v244_v0  ;;  %253 = vmatpush.bf16.msra.mxu3 %v244_v0  ;;  %v252_v2 = vld [vmem:[%s364_s3 + $0x38] sm:$0xff]  ;;  %v251_v3 = vld [vmem:[%s364_s3 + $0x30] sm:$0xff]  ;;  %v250_v5 = vld [vmem:[%s364_s3 + $0x28] sm:$0xff] }
   0x3   :  { %163 = vmatpush.bf16.msra.mxu1 %v252_v2  ;;  %257 = vmatpush.bf16.msra.mxu2 %v252_v2  ;;  %v241_v6 = vld [vmem:[%s363_s1] sm:$0xff]  ;;  %v22_v8 = vld [vmem:[%s366_s0 + $0x8] sm:$0xff]  ;;  %v23_v9 = vld [vmem:[%s366_s0 + $0x10] sm:$0xff] }
   0x4   :  { %v21_v7 = vld [vmem:[%s366_s0] sm:$0xff]  ;;  %v24_v10 = vld [vmem:[%s366_s0 + $0x18] sm:$0xff]  ;;  %v247_v15 = vld [vmem:[%s364_s3 + $0x10] sm:$0xff] }
   0x5   :  { %v249_v11 = vld [vmem:[%s364_s3 + $0x20] sm:$0xff]  ;;  %v34_v12 = vpack.c.bf16 %v22_v8, %v21_v7  ;;  %v35_v13 = vpack.c.bf16 %v24_v10, %v23_v9  ;;  %v248_v14 = vld [vmem:[%s364_s3 + $0x18] sm:$0xff]  ;;  %v246_v16 = vld [vmem:[%s364_s3 + $0x8] sm:$0xff] }
   0x6   :  { %75 = vmatpush.bf16.msra.mxu0 %v243_v1  ;;  %254 = vmatpush.bf16.msra.mxu3 %v243_v1  ;;  %v245_v17 = vld [vmem:[%s364_s3] sm:$0xff] }
   0x7   :  { %164 = vmatpush.bf16.msra.mxu1 %v251_v3  ;;  %258 = vmatpush.bf16.msra.mxu2 %v251_v3  ;;  %v265_v19 = vld [vmem:[%s365_s2] ss:$0 sm:$0xff] }
   0x8   :  { %v266_v33 = vld [vmem:[%s367_s4] ss:$0 sm:$0xff] }
   0xa   :  { %76 = vmatpush.bf16.msra.mxu0 %v242_v4  ;;  %255 = vmatpush.bf16.msra.mxu3 %v242_v4 }
   0xb   :  { %165 = vmatpush.bf16.msra.mxu1 %v250_v5  ;;  %259 = vmatpush.bf16.msra.mxu2 %v250_v5 }
   0xe   :  { %77 = vmatpush.bf16.msra.mxu0 %v241_v6  ;;  %256 = vmatpush.bf16.msra.mxu3 %v241_v6 }
   0xf   :  { %166 = vmatpush.bf16.msra.mxu1 %v249_v11  ;;  %260 = vmatpush.bf16.msra.mxu2 %v249_v11 }
  0x11   :  { %207 = vmatmul.msk.bf16.vlgmr.msra.gmra.mxu0 %vm63_vm0, %v34_v12  ;;  %208 = vmatmul.msk.bf16.vlgmr.msra.gmra.mxu3 %vm63_vm0, %v35_v13 }
  0x13   :  { %167 = vmatpush.bf16.msra.mxu1 %v248_v14  ;;  %261 = vmatpush.bf16.msra.mxu2 %v248_v14 }
  0x17   :  { %168 = vmatpush.bf16.msra.mxu1 %v247_v15  ;;  %262 = vmatpush.bf16.msra.mxu2 %v247_v15 }
  0x1b   :  { %169 = vmatpush.bf16.msra.mxu1 %v246_v16  ;;  %263 = vmatpush.bf16.msra.mxu2 %v246_v16 }
  0x1f   :  { %170 = vmatpush.bf16.msra.mxu1 %v245_v17  ;;  %264 = vmatpush.bf16.msra.mxu2 %v245_v17 }
  0x8e   :  { %v79_v18 = vpop.f32.mrf.mxu0 }
  0x8f   :  { %v80_v20 = vadd.f32 %v265_v19, %v79_v18 }
  0x91   :  { %v89_v23 = vmax.f32 %v80_v20, 0.0 }
  0x94   :  { %v84_v21 = vpop.f32.mrf.mxu3 }
  0x95   :  { %v85_v26 = vadd.f32 %v265_v19, %v84_v21 }
  0x96   :  { %v81_v22 = vpop.f32.mrf.mxu0 }
  0x97   :  { %v82_v24 = vadd.f32 %v265_v19, %v81_v22  ;;  %v91_v30 = vmax.f32 %v85_v26, 0.0 }
  0x99   :  { %v90_v25 = vmax.f32 %v82_v24, 0.0 }
  0x9b   :  { %v110_v27 = vpack.c.bf16 %v90_v25, %v89_v23 }
  0x9c   :  { %v86_v28 = vpop.f32.mrf.mxu3 }
  0x9d   :  { %v87_v29 = vadd.f32 %v265_v19, %v86_v28  ;;  %171 = vmatmul.bf16.vlgmr.msra.gmra.mxu1 %v110_v27 }
  0x9f   :  { %v92_v31 = vmax.f32 %v87_v29, 0.0 }
  0xa1   :  { %v111_v32 = vpack.c.bf16 %v92_v31, %v91_v30 }
  0xa3   :  { %176 = vmatmul.bf16.vlgmr.msra.gmra.mxu2 %v111_v32 }
 0x11a   :  { %v172_v34 = vpop.f32.mrf.mxu1 }
 0x11b   :  { %v173_v35 = vadd.f32 %v266_v33, %v172_v34 }
 0x11d   :  { %183 = vst.msk [vmem:[%s368_s5] sm:$0xff] %vm182_vm1, %v173_v35 }
 0x122   :  { %v174_v36 = vpop.f32.mrf.mxu1 }
 0x123   :  { %v175_v37 = vadd.f32 %v266_v33, %v174_v36 }
 0x125   :  { %184 = vst.msk [vmem:[%s368_s5 + $0x8] sm:$0xff] %vm182_vm1, %v175_v37 }
 0x126   :  { %v177_v38 = vpop.f32.mrf.mxu2 }
 0x127   :  { %v178_v39 = vadd.f32 %v266_v33, %v177_v38 }
 0x129   :  { %185 = vst.msk [vmem:[%s368_s5 + $0x10] sm:$0xff] %vm182_vm1, %v178_v39 }
 0x12e   :  { %v179_v40 = vpop.f32.mrf.mxu2 }
 0x12f   :  { %v180_v41 = vadd.f32 %v266_v33, %v179_v40 }
 0x131   :  { %186 = vst.msk [vmem:[%s368_s5 + $0x18] sm:$0xff] %vm182_vm1, %v180_v41 }

</bundles_post_ra>
